<compile_context>
chip_gen: v7x
topology: tpu7x:2x2x1
jax: 0.10.0
libtpu: 0.0.40
codegen_flags: <defaults>
</compile_context>

<pallas_src>
import jax
import jax.numpy as jnp
import numpy as np
from jax import lax
from jax.experimental import pallas as pl
from jax.experimental.pallas import tpu as pltpu

BN_EPS = 1e-5  # nn.BatchNorm2d default


def _round_up(x, m):
    return (x + m - 1) // m * m


# ---------------------------------------------------------------------------
# Pallas kernels
# ---------------------------------------------------------------------------
def _conv_stats_kernel(w_ref, p_ref, conv_ref, stats_ref):
    """One M-tile: conv = W (Cout, K) @ patches (K, TM)  (lane-dense, f32 accumulation).

    Also emits this tile's per-channel sum and sum-of-squares (rows 0/1 of the lane
    axis of the stats block) so the host can form global training-mode BN statistics
    without another pass over the conv output.
    """
    acc = jnp.dot(w_ref[...], p_ref[...], preferred_element_type=jnp.float32)  # (Cout, TM)
    conv_ref[...] = acc
    rs = jnp.sum(acc, axis=1, keepdims=True)          # (Cout, 1)
    ss = jnp.sum(acc * acc, axis=1, keepdims=True)    # (Cout, 1)
    lane = lax.broadcasted_iota(jnp.int32, stats_ref.shape[1:], 1)   # (Cout, 128)
    stats_ref[0] = jnp.where(lane == 0, rs, jnp.where(lane == 1, ss, 0.0))


def _bn_relu_kernel(params_ref, conv_ref, out_ref):
    """Fused BN affine + ReLU on one lane-dense (Cout, TM) conv tile.

    params is a single packed (Cout, 2) array: column 0 = scale, column 1 = shift.
    """
    prm = params_ref[...]                                  # (Cout, 2)
    y = conv_ref[...] * prm[:, 0:1] + prm[:, 1:2]
    out_ref[...] = jnp.maximum(y, 0.0).astype(out_ref.dtype)


# ---------------------------------------------------------------------------
# Host-side glue: sub-pixel phase decomposition of ConvTranspose2d
# ---------------------------------------------------------------------------
def _phase_info(size_in, size_out, k, s, p):
    """Per output phase r (one spatial axis): which kernel taps contribute and at which
    offset into the (left-padded) input they are read.

    Derived from the ConvTranspose definition: out[oh] = sum_{h,kh: oh = h*s - p + kh} x[h]*W[kh].
    For phase r = oh mod s (oh = s*u + r) the valid m = u - h lie in [m_lo, m_hi] with
    kh = s*m + r + p, and patch column j reads x_padded[u + off + j] paired with kernel
    index k_idx[j] = s*(m_hi - j) + r + p.
    """
    phases = []
    for r in range(s):
        m_lo = -((r + p) // s)             # floor
        m_hi = (k - 1 - r - p) // s        # floor (python // floors negatives too)
        taps = max(0, m_hi - m_lo + 1)
        n_out = max(0, (size_out - r + s - 1) // s)
        phases.append({"m_lo": m_lo, "m_hi": m_hi, "taps": taps, "n_out": n_out,
                       "k_idx": [s * (m_hi - j) + r + p for j in range(taps)]})
    pad_lo = max([0] + [ph["m_hi"] for ph in phases if ph["taps"] > 0])
    pad_hi = max([0] + [ph["n_out"] - ph["m_lo"] - size_in
                        for ph in phases if ph["taps"] > 0 and ph["n_out"] > 0])
    for ph in phases:
        ph["off"] = pad_lo - ph["m_hi"]
    return phases, pad_lo, pad_hi


def conv2d_transpose_bn_relu(x, weight, bias, gamma, beta, *, stride, padding,
                             output_padding=0, tile_m=1024,
                             matmul_dtype=jnp.bfloat16):
    """x: (N, Cin, H, W) f32; weight: (Cin, Cout, KH, KW) (PyTorch ConvTranspose2d layout).

    `bias` is accepted for API parity but unused: under training-mode BatchNorm the
    per-channel conv bias cancels exactly (mean shifts by b, variance unchanged).
    """
    del bias  # cancels under training-mode BN (see header comment)
    s = int(stride); p = int(padding); op = int(output_padding)
    N, Cin, H, W = x.shape
    Cin_w, Cout, KH, KW = weight.shape
    assert Cin_w == Cin
    OH = (H - 1) * s - 2 * p + KH + op
    OW = (W - 1) * s - 2 * p + KW + op
    assert OH > 0 and OW > 0

    h_phases, plh, prh = _phase_info(H, OH, KH, s, p)
    w_phases, plw, prw = _phase_info(W, OW, KW, s, p)

    # channels-last, zero-padded input -- no stride dilation anywhere.
    xpad = jnp.pad(jnp.transpose(x, (0, 2, 3, 1)),
                   ((0, 0), (plh, prh), (plw, prw), (0, 0)))

    compiler_params = pltpu.CompilerParams(
        dimension_semantics=("parallel",),        # shard M tiles across TCs (v7x megacore)
        vmem_limit_bytes=32 * 1024 * 1024)

    tile_m = max(128, _round_up(int(tile_m), 128))

    count = N * OH * OW
    ch_sum = jnp.zeros((Cout,), jnp.float32)
    ch_ssq = jnp.zeros((Cout,), jnp.float32)
    phase_conv = []   # deferred work for pass 2

    # ---------------- pass 1: per-phase lane-dense matmul + per-tile stats ----------------
    for r in range(s):
        hp = h_phases[r]
        for t in range(s):
            wp = w_phases[t]
            ohr, owt = hp["n_out"], wp["n_out"]
            m_rt = N * ohr * owt
            if m_rt == 0:
                continue
            tm = min(tile_m, _round_up(m_rt, 128))
            m_pad = _round_up(m_rt, tm)
            n_tiles = m_pad // tm
            kc = hp["taps"] * wp["taps"] * Cin

            if kc == 0:
                # No kernel tap lands on this phase: conv output is identically zero
                # (still part of the batch statistics; contributes 0 to sum/sumsq).
                conv_full = jnp.zeros((Cout, m_pad), jnp.float32)
                phase_conv.append((r, t, conv_full, ohr, owt, m_rt, tm, n_tiles, m_pad))
                continue

            # im2col of only the real taps for this phase: (Kc, M) with M on the lane axis.
            cols = []
            for jh in range(hp["taps"]):
                for jw in range(wp["taps"]):
                    cols.append(xpad[:, hp["off"] + jh: hp["off"] + jh + ohr,
                                     wp["off"] + jw: wp["off"] + jw + owt, :])
            pat = jnp.stack(cols, axis=3).reshape(m_rt, kc).T        # (Kc, M)
            pat = jnp.pad(pat, ((0, 0), (0, m_pad - m_rt))).astype(matmul_dtype)

            # matching sub-kernel, (Cout, Kc) with K ordered (jh, jw, cin) like the patches.
            w_sub = weight[:, :, jnp.array(hp["k_idx"]), :][:, :, :, jnp.array(wp["k_idx"])]
            w_mat = jnp.transpose(w_sub, (2, 3, 0, 1)).reshape(kc, Cout)
            w_t = w_mat.T.astype(matmul_dtype)                       # (Cout, Kc)

            conv_full, stats = pl.pallas_call(
                _conv_stats_kernel,
                out_shape=(jax.ShapeDtypeStruct((Cout, m_pad), jnp.float32),
                           jax.ShapeDtypeStruct((n_tiles, Cout, 128), jnp.float32)),
                grid=(n_tiles,),
                in_specs=[pl.BlockSpec((Cout, kc), lambda i: (0, 0)),
                          pl.BlockSpec((kc, tm), lambda i: (0, i))],
                out_specs=(pl.BlockSpec((Cout, tm), lambda i: (0, i)),
                           pl.BlockSpec((1, Cout, 128), lambda i: (i, 0, 0))),
                compiler_params=compiler_params,
            )(w_t, pat)

            # padded columns are zero, so they add nothing to sum / sumsq.
            ch_sum = ch_sum + jnp.sum(stats[:, :, 0], axis=0)
            ch_ssq = ch_ssq + jnp.sum(stats[:, :, 1], axis=0)
            phase_conv.append((r, t, conv_full, ohr, owt, m_rt, tm, n_tiles, m_pad))

    # ---- global training-mode BN statistics (biased variance), folded with gamma/beta ----
    mean = ch_sum / count
    var = ch_ssq / count - mean * mean
    scale = gamma.astype(jnp.float32) * lax.rsqrt(var + BN_EPS)
    shift = beta.astype(jnp.float32) - mean * scale
    params = jnp.stack([scale, shift], axis=1)        # packed (Cout, 2)

    # ---------------- pass 2: fused affine + ReLU, then sub-pixel reassembly ----------------
    out = jnp.zeros((N, Cout, OH, OW), x.dtype)
    for (r, t, conv_full, ohr, owt, m_rt, tm, n_tiles, m_pad) in phase_conv:
        y = pl.pallas_call(
            _bn_relu_kernel,
            out_shape=jax.ShapeDtypeStruct((Cout, m_pad), x.dtype),
            grid=(n_tiles,),
            in_specs=[pl.BlockSpec((Cout, 2), lambda i: (0, 0)),
                      pl.BlockSpec((Cout, tm), lambda i: (0, i))],
            out_specs=pl.BlockSpec((Cout, tm), lambda i: (0, i)),
            compiler_params=compiler_params,
        )(params, conv_full)
        blk = y[:, :m_rt].reshape(Cout, N, ohr, owt).transpose(1, 0, 2, 3)
        out = out.at[:, :, r::s, t::s].set(blk)
    return out


# ---------------------------------------------------------------------------
# Independent pure-JAX reference (keeps the conv bias -> proves it cancels)
# ---------------------------------------------------------------------------
def _reference(x, weight, bias, gamma, beta, stride, padding, output_padding):
    Cin, Cout, KH, KW = weight.shape
    pph, ppw = KH - 1 - padding, KW - 1 - padding
    w_conv = jnp.transpose(weight[:, :, ::-1, ::-1], (1, 0, 2, 3))   # (Cout, Cin, KH, KW)
    conv = lax.conv_general_dilated(
        x, w_conv, window_strides=(1, 1),
        padding=((pph, pph + output_padding), (ppw, ppw + output_padding)),
        lhs_dilation=(stride, stride),
        dimension_numbers=("NCHW", "OIHW", "NCHW"))
    conv = conv + bias.reshape(1, Cout, 1, 1)
    mean = conv.mean(axis=(0, 2, 3), keepdims=True)
    var = ((conv - mean) ** 2).mean(axis=(0, 2, 3), keepdims=True)
    y = (conv - mean) * lax.rsqrt(var + BN_EPS) * gamma.reshape(1, Cout, 1, 1) \
        + beta.reshape(1, Cout, 1, 1)
    return jnp.maximum(y, 0.0)


if __name__ == "__main__":
    # HyperLipsHR-style decoder block: cin=4, cout=8, k=4, stride=2, pad=1
    N, Cin, H, W = 2, 4, 16, 16
    Cout, K, stride, padding, output_padding = 8, 4, 2, 1, 0

    key = jax.random.PRNGKey(0)
    kx, kw, kb, kg, kbeta = jax.random.split(key, 5)
    x = jax.random.normal(kx, (N, Cin, H, W), jnp.float32)
    weight = 0.1 * jax.random.normal(kw, (Cin, Cout, K, K), jnp.float32)   # ConvTranspose2d layout
    bias = 0.1 * jax.random.normal(kb, (Cout,), jnp.float32)
    gamma = 1.0 + 0.1 * jax.random.normal(kg, (Cout,), jnp.float32)        # BN weight
    beta = 0.1 * jax.random.normal(kbeta, (Cout,), jnp.float32)            # BN bias

    ref = _reference(x, weight, bias, gamma, beta, stride, padding, output_padding)

    # 1) exact-math path (f32 matmul operands) with a small tile so the multi-tile grid,
    #    padded tail and cross-tile stats reduction are all exercised; tight tolerance
    #    validates the phase-decomposition indexing exactly.
    out_f32 = conv2d_transpose_bn_relu(
        x, weight, bias, gamma, beta, stride=stride, padding=padding,
        output_padding=output_padding, tile_m=384, matmul_dtype=jnp.float32)
    out_f32 = jax.block_until_ready(out_f32)
    np.testing.assert_allclose(np.asarray(out_f32), np.asarray(ref), rtol=1e-4, atol=1e-4)

    # 2) production path: bf16 MXU operands, f32 accumulation, f32 BN/ReLU epilogue.
    out = conv2d_transpose_bn_relu(
        x, weight, bias, gamma, beta, stride=stride, padding=padding,
        output_padding=output_padding, tile_m=384)
    out = jax.block_until_ready(out)
    np.testing.assert_allclose(np.asarray(out), np.asarray(ref), rtol=3e-2, atol=3e-2)

    assert out.shape == (N, Cout, (H - 1) * stride - 2 * padding + K + output_padding,
                         (W - 1) * stride - 2 * padding + K + output_padding)
    print("KERNEL_OK")
</pallas_src>

<mosaic_0001>
module attributes {stable_mosaic.version = 11 : i64} {
  func.func @_conv_stats_kernel(%arg0: i32, %arg1: memref<8x16xf32, #tpu.memory_space<vmem>>, %arg2: memref<16x384xf32, #tpu.memory_space<vmem>>, %arg3: memref<8x384xf32, #tpu.memory_space<vmem>>, %arg4: memref<1x8x128xf32, #tpu.memory_space<vmem>>) attributes {dimension_semantics = [#tpu.dimension_semantics<parallel>], iteration_bounds = array<i64: 2>, scalar_prefetch = 0 : i64, scratch_operands = 0 : i64, tpu.core_type = #tpu.core_type<tc>, window_params = [{pipeline_mode = #tpu.pipeline_mode<synchronous>, transform_indices = @transform_0, window_bounds = array<i64: 8, 16>}, {transform_indices = @transform_1, window_bounds = array<i64: 16, 384>}, {transform_indices = @transform_2, window_bounds = array<i64: 8, 384>}, {transform_indices = @transform_3, window_bounds = array<i64: 1, 8, 128>}]} {
    %c0 = arith.constant 0 : index
    %c0_0 = arith.constant 0 : index
    %0 = vector.load %arg1[%c0, %c0_0] : memref<8x16xf32, #tpu.memory_space<vmem>>, vector<8x16xf32>
    %c0_1 = arith.constant 0 : index
    %c0_2 = arith.constant 0 : index
    %1 = vector.load %arg2[%c0_1, %c0_2] : memref<16x384xf32, #tpu.memory_space<vmem>>, vector<16x384xf32>
    %cst = arith.constant dense<0.000000e+00> : vector<8x384xf32>
    %2 = tpu.matmul %0, %1, %cst {dimension_numbers = #tpu.dot_dimension_numbers<[1], [0], [0], [1], [0, 0, 1, 1], [], []>} : vector<8x16xf32>, vector<16x384xf32>, vector<8x384xf32> -> vector<8x384xf32>
    %c0_3 = arith.constant 0 : index
    %c0_4 = arith.constant 0 : index
    %3 = vector.load %arg3[%c0_3, %c0_4] : memref<8x384xf32, #tpu.memory_space<vmem>>, vector<8x384xf32>
    tpu.vector_store %arg3[%c0_3, %c0_4], %2 {strides = array<i32>} : memref<8x384xf32, #tpu.memory_space<vmem>>, vector<8x384xf32>,
    %cst_5 = arith.constant dense<0.000000e+00> : vector<8xf32>
    %4 = vector.multi_reduction <add>, %2, %cst_5 [1] : vector<8x384xf32> to vector<8xf32>
    %5 = vector.shape_cast %4 : vector<8xf32> to vector<8x1xf32>
    %6 = arith.mulf %2, %2 : vector<8x384xf32>
    %cst_6 = arith.constant dense<0.000000e+00> : vector<8xf32>
    %7 = vector.multi_reduction <add>, %6, %cst_6 [1] : vector<8x384xf32> to vector<8xf32>
    %8 = vector.shape_cast %7 : vector<8xf32> to vector<8x1xf32>
    %9 = tpu.iota {dimensions = array<i32: 1>} : vector<8x128xi32>
    %c0_i32 = arith.constant 0 : i32
    %10 = vector.broadcast %c0_i32 : i32 to vector<8x128xi32>
    %11 = arith.cmpi eq, %9, %10 : vector<8x128xi32>
    %c1_i32 = arith.constant 1 : i32
    %12 = vector.broadcast %c1_i32 : i32 to vector<8x128xi32>
    %13 = arith.cmpi eq, %9, %12 : vector<8x128xi32>
    %cst_7 = arith.constant 0.000000e+00 : f32
    %14 = vector.shape_cast %8 : vector<8x1xf32> to vector<8x1xf32>
    %15 = vector.broadcast %14 : vector<8x1xf32> to vector<8x128xf32>
    %16 = vector.broadcast %cst_7 : f32 to vector<8x128xf32>
    %17 = arith.select %13, %15, %16 : vector<8x128xi1>, vector<8x128xf32>
    %18 = vector.shape_cast %5 : vector<8x1xf32> to vector<8x1xf32>
    %19 = vector.broadcast %18 : vector<8x1xf32> to vector<8x128xf32>
    %20 = arith.select %11, %19, %17 : vector<8x128xi1>, vector<8x128xf32>
    %c0_8 = arith.constant 0 : index
    %c0_9 = arith.constant 0 : index
    %c0_10 = arith.constant 0 : index
    %21 = vector.load %arg4[%c0_8, %c0_9, %c0_10] : memref<1x8x128xf32, #tpu.memory_space<vmem>>, vector<1x8x128xf32>
    %22 = vector.shape_cast %21 : vector<1x8x128xf32> to vector<8x128xf32>
    %23 = vector.shape_cast %20 : vector<8x128xf32> to vector<1x8x128xf32>
    tpu.vector_store %arg4[%c0_8, %c0_9, %c0_10], %23 {strides = array<i32>} : memref<1x8x128xf32, #tpu.memory_space<vmem>>, vector<1x8x128xf32>,
    return
  }
  func.func @transform_0(%arg0: i32) -> (i32, i32) {
    %c0_i32 = arith.constant 0 : i32
    %c0_i32_0 = arith.constant 0 : i32
    %c0_i32_1 = arith.constant 0 : i32
    return %c0_i32, %c0_i32_0 : i32, i32
  }
  func.func @transform_1(%arg0: i32) -> (i32, i32) {
    %c0_i32 = arith.constant 0 : i32
    %c0_i32_0 = arith.constant 0 : i32
    return %c0_i32, %arg0 : i32, i32
  }
  func.func @transform_2(%arg0: i32) -> (i32, i32) {
    %c0_i32 = arith.constant 0 : i32
    %c0_i32_0 = arith.constant 0 : i32
    return %c0_i32, %arg0 : i32, i32
  }
  func.func @transform_3(%arg0: i32) -> (i32, i32, i32) {
    %c0_i32 = arith.constant 0 : i32
    %c0_i32_0 = arith.constant 0 : i32
    %c0_i32_1 = arith.constant 0 : i32
    return %arg0, %c0_i32, %c0_i32_0 : i32, i32, i32
  }
}

</mosaic_0001>

<bundles_post_ra>
// kernel: tpu_custom_call.1
= control target key start
LH: loop header
LB: loop body
LE: loop exit
PB: predicated region body
PF: predicated region fallthrough
CT: control target
= control target key end

     0   :  { %9 = vsyncpa [#allocation3], 0  ;;  %s1054_s0 = inlined_call_operand.hbm [shape: f32[8,16], index: 0, kind: input, shape index: {}]   ;;  %s1055_s1 = inlined_call_operand.hbm [shape: f32[16,768], index: 1, kind: input, shape index: {}]   ;;  %s1056_s2 = inlined_call_operand.hbm [shape: f32[8,768], index: 2, kind: output, shape index: {0}]   ;;  %s1057_s3 = inlined_call_operand.hbm [shape: f32[2,8,128], index: 3, kind: output, shape index: {1}]  }
   0x1   :  { %10 = vsyncpa [#allocation6], 0 }
   0x2   :  { %12 = vsyncpa [#allocation6 + $0x1], 0 }
   0x3   :  { %13 = vsyncpa [#allocation4], 0 }
   0x4   :  { %15 = vsyncpa [#allocation4 + $0x1], 0 }
   0x5   :  { %16 = vsyncpa [#allocation9], 0 }
   0x6   :  { %18 = vsyncpa [#allocation9 + $0x1], 0  ;;  %s832_s12 = smov 0   ;;  %s834_s13 = smov 0  }
   0x7   :  { %s836_s14 = smov 0   ;;  %s838_s15 = smov 0  }
   0x8 LB: > { %s853_s16 = sadd.s32 4294967295, %s800_s15   ;;  %s535_s17 = sadd.s32 4294967294, %s800_s15   ;;  %s800_s15 = sphi %s838_s15, %s1082_s15   ;;  %s796_s14 = sphi %s836_s14, %s1081_s14   ;;  %s792_s13 = sphi %s834_s13, %s1080_s13   ;;  %s788_s12 = sphi %s832_s12, %s1079_s12  }
   0x9   : > { %s857_s18 = sadd.s32 1, %s800_s15   ;;  %s52_s19 = sadd.s32 1, %s796_s14 }
   0xa   : > { %s49_s20 = ssub.s32 %s800_s15, %s857_s18  ;;  %p59_p0 = scmp.ne.s32.totalorder %s796_s14, %s792_s13 }
   0xb   : > { %p50_p1 = scmp.eq.s32.totalorder %s49_s20, 0  ;;  %p60_p2 = scmp.eq.s32.totalorder %s800_s15, 0 }
   0xc   : > { %p65_p3 = scmp.ne.s32.totalorder %s792_s13, %s788_s12  ;;  %p1058_p4 = scmp.eq.s32.totalorder %s853_s16, 0 }
   0xd   : > { %s869_s21 = scalar_select %p50_p1, %s796_s14, %s52_s19  }
   0xe   : > { %p871_p5 = por %p60_p2, %p59_p0  ;;  %p877_p6 = por %p1058_p4, %p65_p3 }
   0xf   : > { %p89_p7 = scmp.eq.s32.totalorder %s853_s16, 1  ;;  %p95_p8 = scmp.eq.s32.totalorder %s535_s17, 1 }
  0x10   : > { %s1064_s23 = scalar_select %p877_p6, 1, 0 }
  0x11   : > { %p536_p9 = scmp.ge.s32.totalorder %s800_s15, 1  ;;  %p128_p10 = scmp.lt.s32.totalorder %s800_s15, 3 }
  0x12   : > { %p884_p11 = por %p89_p7, %p59_p0  ;;  %p888_p12 = por %p95_p8, %p65_p3 }
  0x13   : > { %p892_p13 = pnand %p536_p9, %p128_p10  ;;  %s802_s27 = smov [#allocation2]  }
  0x14   : > { %s1065_s24 = scalar_select %p884_p11, 1, 0 }
  0x15   : > { %s1066_s25 = scalar_select %p888_p12, 1, 0 }
  0x16   : > { %s1067_s26 = scalar_select %p892_p13, 1, 0 }
  0x17   : > { %p582_p2 = pneg %p892_p13  ;;  %s141_s28 = sshll.u32 %s802_s27, 4  ;;  %s142_s28 = int_to_ptr.vmem [resolvable:$true] %s141_s28 }
  0x18   : > { %p598_p4 = scmp.lt.s32.totalorder %s800_s15, 2  ;;  %p1068_p0 = scmp.eq.s32.totalorder %s853_s16, 0 }
  0x19   : > { %s152_s30 = sand.u32 1, %s796_s14   ;;  %s640_s8 = scalar_lea.hbm %s1054_s0, 128 }
  0x1a   : > { %p902_p7 = pnand %p582_p2, %p1068_p0  ;;  %p909_p3 = pnand %p598_p4, %p871_p5 }
  0x1b   : > { %s569_s5 = smul.u32 48, %s152_s30  ;;  %p641_p8 = scmp.ne.s32.totalorder %s1054_s0, %s640_s8 }
  0x1c   : > { %s1070_s4 = scalar_select %p909_p3, 1, 0 }
  0x1d   : > { %p642_p9 = pneg %p902_p7  ;;  %p647_p4 = scmp.lt.u32.totalorder %s640_s8, %s1054_s0 }
  0x1f   : > { %p643_p10 = pnand %p642_p9, %p641_p8 }
  0x21   : > { %p644_p2 = pneg %p643_p10 }
  0x23   : > { %p649_p5 = pnand %p647_p4, %p644_p2 }
  0x25   : > { %652 = shalt.err (!%p649_p5)
}
  0x26   : > { %s653_s19 = scalar_lea.vmem %s142_s28, 128  ;;  %p661_p11 = scmp.lt.s32.totalorder %s142_s28, %s142_s28 }
  0x27   : > { %p654_p0 = scmp.ne.s32.totalorder %s142_s28, %s653_s19  ;;  %p662_p6 = scmp.lt.s32.totalorder %s653_s19, %s653_s19 }
  0x29   : > { %p656_p1 = pnand %p654_p0, %p642_p9  ;;  %p663_p13 = por %p662_p6, %p661_p11 }
  0x2b   : > { %p657_p12 = pneg %p656_p1 }
  0x2d   : > { %p664_p3 = pnand %p663_p13, %p657_p12 }
  0x2f   : > { %667 = shalt.err (!%p664_p3)
}
  0x30   : > { %585 = dma.hbm_to_vmem [thread:$0]  (!%p902_p7), %s1054_s0, 128, %s142_s28, [#allocation3]  }
  0x31   : > { %s550_s27 = smul.u32 384, %s800_s15  ;;  %s156_s6 = scalar_lea.vmem [#allocation5], %s569_s5 }
  0x32   : > { %s163_s7 = sshll.u32 %s156_s6, 4  ;;  %s937_s29 = scalar_lea.sflag [#allocation6], %s152_s30  ;;  %s930_s7 = int_to_ptr.vmem [resolvable:$true] %s163_s7 }
  0x33   : > { %s935_s10 = scalar_lea.hbm %s1055_s1, %s550_s27  ;;  %p1071_p11 = scmp.ne.s32.totalorder %s1070_s4, 0 }
  0x34   : > { %s668_s11 = scalar_lea.hbm %s935_s10, 768  ;;  %s673_s17 = scalar_lea.hbm %s1055_s1, 1536 }
  0x35   : > { %p669_p6 = scmp.ne.s32.totalorder %s935_s10, %s668_s11  ;;  %p670_p12 = pneg %p1071_p11 }
  0x36   : > { %p674_p7 = scmp.lt.u32.totalorder %s935_s10, %s1055_s1  ;;  %p675_p3 = scmp.lt.u32.totalorder %s673_s17, %s668_s11 }
  0x37   : > { %p671_p13 = pnand %p670_p12, %p669_p6  ;;  %p677_p9 = scmp.lt.u32.totalorder %s668_s11, %s935_s10 }
  0x38   : > { %p676_p8 = por %p675_p3, %p674_p7 }
  0x39   : > { %p672_p1 = pneg %p671_p13 }
  0x3a   : > { %p678_p10 = por %p677_p9, %p676_p8 }
  0x3c   : > { %p679_p2 = pnand %p678_p10, %p672_p1 }
  0x3e   : > { %682 = shalt.err (!%p679_p2)
}
  0x3f   : > { %s683_s30 = scalar_lea.vmem %s930_s7, 768  ;;  %s803_s22 = smov [#allocation5]  }
  0x40   : > { %p684_p4 = scmp.ne.s32.totalorder %s930_s7, %s683_s30  ;;  %s688_s27 = sshll.u32 %s803_s22, 4  ;;  %s689_s27 = int_to_ptr.vmem [resolvable:$false] %s688_s27 }
  0x41   : > { %s690_s6 = scalar_lea.vmem %s689_s27, 1536  ;;  %p691_p6 = scmp.lt.s32.totalorder %s930_s7, %s689_s27 }
  0x42   : > { %p686_p5 = pnand %p684_p4, %p670_p12  ;;  %p692_p13 = scmp.lt.s32.totalorder %s690_s6, %s683_s30 }
  0x44   : > { %p687_p0 = pneg %p686_p5  ;;  %p693_p7 = por %p692_p13, %p691_p6 }
  0x46   : > { %p694_p3 = pnand %p693_p7, %p687_p0 }
  0x48   : > { %697 = shalt.err (!%p694_p3)
}
  0x49   : > { %s804_s8 = smov 768   ;;  %s805_s9 = smov 384  }
  0x4a   : > { %s806_s11 = smov 24   ;;  %p1072_p12 = scmp.ne.s32.totalorder %s1067_s26, 0 }
  0x4b   : > { %589 = dma.hbm_to_vmem [thread:$0]  (!%p1071_p11), %s935_s10, 768, %s930_s7, %s937_s29, %s804_s8, %s805_s9, %s806_s11  }
  0x4c   : > { %175 = sbr.rel (%p1072_p12) target bundleno = 476 (0x1dc), region = 28  ;;  %p1073_p1 = scmp.eq.s32.totalorder (!%p1072_p12), %s853_s16, 0 }
  0x53   : > { %771 = dma.done.wait (%p1073_p1), [#allocation3], 128   ;;  %p1074_p8 = pmov %p1073_p1 }
  0x54   : > { %s972_s28 = sand.u32 1, %s792_s13   ;;  %p1075_p9 = scmp.ne.s32.totalorder %s1064_s23, 0 }
  0x55   : > { %773 = vsyncadd (%p1074_p8), [#allocation3], 4294967168  ;;  %s570_s5 = smul.u32 48, %s972_s28  ;;  %s182_s17 = scalar_lea.sflag [#allocation6], %s972_s28 }
  0x57   : > { %s185_s19 = scalar_lea.vmem [#allocation5], %s570_s5 }
  0x58   : > { %775 = dma.done.wait (%p1075_p9), %s182_s17, 768  }
  0x59   : > { %777 = vsyncadd (%p1075_p9), %s182_s17, 4294966528  ;;  %v807_v0 = vmov 0.0|0.0   ;;  %v808_v1 = vmov 0.0   ;;  %vm809_vm0 = vmmov 0   ;;  %v217_v2 = vld [vmem:[%s185_s19 + $0x8] sm:$0xff]  ;;  %v220_v3 = vld [vmem:[%s185_s19 + $0x20] sm:$0xff] }
  0x5a   : > { %566 = vmatprep.subr.bf16.mxu1 %v807_v0  ;;  %290 = vmatprep.mubr.f32.mxu0 %v808_v1  ;;  %v216_v4 = vld [vmem:[%s185_s19] sm:$0xff]  ;;  %v562_v5 = vpack.c.bf16 %v220_v3, %v217_v2  ;;  %v219_v6 = vld [vmem:[%s185_s19 + $0x18] sm:$0xff]  ;;  %v218_v7 = vld [vmem:[%s185_s19 + $0x10] sm:$0xff]  ;;  %vm222_vm1 = vcmask 130048   ;;  %s571_s23 = smul.u32 24, %s972_s28  ;;  %s389_s30 = scalar_lea.sflag [#allocation4], %s972_s28 }
  0x5b   : > { %559 = vmatprep.mubr.msk.f32.mxu1 %vm809_vm0, %v808_v1  ;;  %v221_v8 = vld [vmem:[%s185_s19 + $0x28] sm:$0xff]  ;;  %v564_v9 = vpack.c.bf16 %v219_v6, %v216_v4  ;;  %s551_s7 = smul.u32 384, %s853_s16  ;;  %p1076_p10 = scmp.ne.s32.totalorder %s1065_s24, 0 }
  0x5c   : > { %v567_v10 = vpack.c.bf16 %v221_v8, %v218_v7  ;;  %563 = vmatprep.subr.bf16.mxu0 %v562_v5  ;;  %v215_v11 = vld [vmem:[#allocation2] sm:$0xff]  ;;  %s205_s26 = scalar_lea.vmem [#allocation7], %s571_s23  ;;  %s810_s27 = smov [#allocation7]  }
  0x5d   : > { %565 = vmatpush1.bf16.msra.mxu0 %v564_v9  ;;  %s408_s4 = sshll.u32 %s205_s26, 4  ;;  %s985_s20 = scalar_lea.hbm %s1056_s2, %s551_s7  ;;  %s409_s4 = int_to_ptr.vmem [resolvable:$true] %s408_s4 }
  0x5e   : > { %568 = vmatpush3.bf16.msra.mxu1 %v567_v10  ;;  %s698_s22 = scalar_lea.vmem %s409_s4, 384  ;;  %s702_s6 = sshll.u32 %s810_s27, 4  ;;  %s703_s6 = int_to_ptr.vmem [resolvable:$false] %s702_s6 }
  0x5f   : > { %p699_p11 = scmp.ne.s32.totalorder %s409_s4, %s698_s22  ;;  %s704_s8 = scalar_lea.vmem %s703_s6, 768 }
  0x60   : > { %543 = vmatmul.mubr.msk.f32.vlgmr.msra.gmra.mrb[0].mxu0 %vm222_vm1, %v215_v11  ;;  %p705_p5 = scmp.lt.s32.totalorder %s409_s4, %s703_s6  ;;  %p706_p0 = scmp.lt.s32.totalorder %s704_s8, %s698_s22 }
  0x61   : > { %560 = vmatmul.mubr.msk.f32.vlgmr.msra.gmra.mrb[0].mxu1 %vm222_vm1, %v215_v11  ;;  %p700_p2 = pnand %p699_p11, %p1076_p10 }
  0x62   : > { %p707_p6 = por %p706_p0, %p705_p5 }
  0x63   : > { %p701_p4 = pneg %p700_p2 }
  0x65   : > { %p708_p13 = pnand %p707_p6, %p701_p4 }
 0x133   : > { %v292_v12 = vpop.f32.mrb[0].mxu0 }
 0x134   : > { %v363_v13 = vpop.f32.mrb[0].mxu1  ;;  %367 = vst [vmem:[%s205_s26] sm:$0xff] %v292_v12  ;;  %v374_v14 = vmul.f32 %v292_v12, %v292_v12  ;;  %v294_v15 = vpop.f32.mrb[1].mxu0 }
 0x135   : > { %369 = vst [vmem:[%s205_s26 + $0x10] sm:$0xff] %v363_v13  ;;  %v561_v16 = vpop.f32.mrb[1].mxu1  ;;  %368 = vst [vmem:[%s205_s26 + $0x8] sm:$0xff] %v294_v15  ;;  %v370_v17 = vadd.f32 %v294_v15, %v292_v12  ;;  %v375_v18 = vmul.f32 %v294_v15, %v294_v15  ;;  %v376_v19 = vmul.f32 %v363_v13, %v363_v13 }
 0x137   : > { %v377_v20 = vadd.f32 %v375_v18, %v374_v14  ;;  %v371_v21 = vadd.f32 %v370_v17, %v363_v13 }
 0x139   : > { %v378_v22 = vadd.f32 %v377_v20, %v376_v19 }
 0x13b   : > { %379 = vadd.xlane.f32.xlu0 %v378_v22 }
 0x13f   : > { %372 = vadd.xlane.f32.xlu0 %v371_v21 }
 0x140   : > { %711 = shalt.err (!%p708_p13)
}
 0x141   : > { %s712_s9 = scalar_lea.hbm %s985_s20, 384  ;;  %s716_s17 = scalar_lea.hbm %s1056_s2, 768 }
 0x142   : > { %p713_p7 = scmp.ne.s32.totalorder %s985_s20, %s712_s9  ;;  %p717_p1 = scmp.lt.u32.totalorder %s985_s20, %s1056_s2 }
 0x143   : > { %p718_p8 = scmp.lt.u32.totalorder %s716_s17, %s712_s9  ;;  %p720_p11 = scmp.lt.u32.totalorder %s712_s9, %s985_s20 }
 0x144   : > { %p714_p3 = pnand %p713_p7, %p1076_p10 }
 0x145   : > { %p719_p9 = por %p718_p8, %p717_p1 }
 0x146   : > { %p715_p12 = pneg %p714_p3 }
 0x147   : > { %p721_p2 = por %p720_p11, %p719_p9 }
 0x149   : > { %p722_p4 = pnand %p721_p2, %p715_p12 }
 0x14b   : > { %725 = shalt.err (!%p722_p4)
}
 0x14c   : > { %578 = dma.vmem_to_hbm [thread:$0]  (%p1076_p10), %s409_s4, 384, %s985_s20, %s389_s30   ;;  %v381_v23 = vlaneseq }
 0x14d   : > { %s542_s26 = sshll.u32 %s972_s28, 3  ;;  %s547_s7 = sshll.u32 %s853_s16, 7 }
 0x14e   : > { %v382_v24 = vand.u32 127, %v381_v23  ;;  %s212_s10 = scalar_lea.vmem [#allocation8], %s542_s26  ;;  %s1010_s6 = scalar_lea.hbm %s1057_s3, %s547_s7 }
 0x14f   : > { %s421_s29 = sshll.u32 %s212_s10, 4  ;;  %s394_s4 = scalar_lea.sflag [#allocation9], %s972_s28  ;;  %s1012_s29 = int_to_ptr.vmem [resolvable:$true] %s421_s29 }
 0x150   : > { %vm384_vm2 = vcmp.eq.s32.totalorder %v382_v24, 1  ;;  %vm383_vm3 = vcmp.eq.s32.totalorder %v382_v24, 0  ;;  %s726_s20 = scalar_lea.vmem %s1012_s29, 128  ;;  %s811_s16 = smov [#allocation8]  }
 0x151   : > { %p727_p5 = scmp.ne.s32.totalorder %s1012_s29, %s726_s20  ;;  %s730_s30 = sshll.u32 %s811_s16, 4  ;;  %s731_s30 = int_to_ptr.vmem [resolvable:$false] %s730_s30 }
 0x152   : > { %s732_s8 = scalar_lea.vmem %s731_s30, 256  ;;  %p733_p13 = scmp.lt.s32.totalorder %s1012_s29, %s731_s30 }
 0x153   : > { %p728_p0 = pnand %p727_p5, %p1076_p10  ;;  %p734_p7 = scmp.lt.s32.totalorder %s732_s8, %s726_s20 }
 0x155   : > { %p729_p6 = pneg %p728_p0  ;;  %p735_p3 = por %p734_p7, %p733_p13 }
 0x157   : > { %p736_p12 = pnand %p735_p3, %p729_p6 }
 0x1c8   : > { %v380_v25 = vpop.xlane.xlu0 %379 }
 0x1c9   : > { %v385_v26 = vsel %vm384_vm2, %v380_v25, 0.0 }
 0x1cc   : > { %v373_v27 = vpop.xlane.xlu0 %372 }
 0x1cd   : > { %v386_v28 = vsel %vm383_vm3, %v373_v27, %v385_v26 }
 0x1ce   : > { %387 = vst [vmem:[%s212_s10] sm:$0xff] %v386_v28 }
 0x1cf   : > { %739 = shalt.err (!%p736_p12)
}
 0x1d0   : > { %s740_s28 = scalar_lea.hbm %s1010_s6, 128  ;;  %s744_s5 = scalar_lea.hbm %s1057_s3, 256 }
 0x1d1   : > { %p741_p1 = scmp.ne.s32.totalorder %s1010_s6, %s740_s28  ;;  %p745_p11 = scmp.lt.u32.totalorder %s1010_s6, %s1057_s3 }
 0x1d2   : > { %p746_p2 = scmp.lt.u32.totalorder %s744_s5, %s740_s28  ;;  %p748_p5 = scmp.lt.u32.totalorder %s740_s28, %s1010_s6 }
 0x1d3   : > { %p742_p8 = pnand %p741_p1, %p1076_p10 }
 0x1d4   : > { %p747_p4 = por %p746_p2, %p745_p11 }
 0x1d5   : > { %p743_p9 = pneg %p742_p8 }
 0x1d6   : > { %p749_p0 = por %p748_p5, %p747_p4 }
 0x1d8   : > { %p750_p6 = pnand %p749_p0, %p743_p9 }
 0x1da   : > { %753 = shalt.err (!%p750_p6)
}
 0x1db   : > { %579 = dma.vmem_to_hbm [thread:$0]  (%p1076_p10), %s1012_s29, 128, %s1010_s6, %s394_s4  }
 0x1dc PF: > { %s433_s23 = sand.u32 1, %s788_s12   ;;  %p1077_p13 = scmp.ne.s32.totalorder %s1066_s25, 0 }
 0x1dd   : > { %p1078_p7 = scmp.ge.s32.totalorder %s800_s15, 2  ;;  %s434_s26 = scalar_lea.sflag [#allocation4], %s433_s23 }
 0x1df   : > { %p591_p3 = pnand %p1078_p7, %p1077_p13 }
 0x1e1   : > { %779 = dma.done.wait (!%p591_p3), %s434_s26, 384  }
 0x1e2   : > { %781 = vsyncadd (!%p591_p3), %s434_s26, 4294966912  ;;  %s443_s7 = scalar_lea.sflag [#allocation9], %s433_s23 }
 0x1e3   : > { %783 = dma.done.wait (!%p591_p3), %s443_s7, 128  }
 0x1e4   : > { %785 = vsyncadd (!%p591_p3), %s443_s7, 4294967168  ;;  %p21_p10 = scmp.ge.s32.totalorder %s857_s18, 4   ;;  %s1079_s12 = smov %s792_s13 }
 0x1e5   : > { %s1080_s13 = smov %s796_s14  ;;  %s1081_s14 = smov %s869_s21 }
 0x1e6   : > { %s1082_s15 = smov %s857_s18  ;;  %23 = sbr.rel (!%p21_p10) target bundleno = 8 (0x8), region = 95 }
 0x1ed   :  { %448 = vsyncpa [#allocation3], 1 }
 0x1ee   :  { %450 = vsyncpa [#allocation3 + $0x1], 1 }
 0x1ef   :  { %451 = vsyncpa [#allocation6], 1 }
 0x1f0   :  { %453 = vsyncpa [#allocation6 + $0x1], 1 }
 0x1f1   :  { %454 = vsyncpa [#allocation4], 1 }
 0x1f2   :  { %456 = vsyncpa [#allocation4 + $0x1], 1 }
 0x1f3   :  { %457 = vsyncpa [#allocation9], 1 }
 0x1f4   :  { %459 = vsyncpa [#allocation9 + $0x1], 1 }

</bundles_post_ra>
